<compile_context>
chip_gen: v7x
topology: tpu7x:2x2x1
jax: 0.10.0
libtpu: 0.0.40
codegen_flags: <defaults>
</compile_context>

<pallas_src>
import jax
import jax.numpy as jnp
from jax.experimental import pallas as pl
from jax.experimental.pallas import tpu as pltpu


def _round_up(x: int, m: int) -> int:
    return ((x + m - 1) // m) * m


def _pick_tile(n_pad: int, max_tile: int, min_tiles: int = 1) -> int:
    """Largest multiple of 128 that divides n_pad, is <= max_tile and leaves
    at least `min_tiles` tiles (falls back to 128 if impossible)."""
    m = n_pad // 128
    best = 128
    for d in range(1, m + 1):
        if m % d:
            continue
        t = 128 * d
        if t <= max_tile and (n_pad // t) >= min_tiles:
            best = t
    return best


def _vmem_limit(est_bytes: int) -> int:
    # actual usage + headroom, clamped so it fits every generation (v7x: 64 MiB/TC)
    return int(min(max(est_bytes + (8 << 20), 32 << 20), 64 << 20))


def _default_compute_dtype():
    # bf16 halves the HBM traffic of the dominant, memory-bound A stream on
    # v6e/v7x; accumulation stays f32.  f32 elsewhere / if detection fails.
    try:
        kind = jax.devices()[0].device_kind.lower()
    except Exception:
        return jnp.float32
    return jnp.bfloat16 if ("v6" in kind or "v7" in kind) else jnp.float32


def _pad_cast_2d(x, rows, cols, dtype):
    if x.dtype != dtype:
        x = x.astype(dtype)
    if x.shape != (rows, cols):
        x = jnp.pad(x, ((0, rows - x.shape[0]), (0, cols - x.shape[1])))
    return x


# -----------------------------------------------------------------------------
# Stage 1: XW = X @ W^T   (the nn.Linear matmul, done once per layer).
# -----------------------------------------------------------------------------
def _linear_kernel(x_ref, wt_ref, o_ref):
    o_ref[...] = jnp.dot(
        x_ref[...], wt_ref[...], preferred_element_type=jnp.float32
    ).astype(o_ref.dtype)


def _linear(x, wt, *, tile_rows, out_dtype):
    n_pad, fin_pad = x.shape
    _, fout_pad = wt.shape
    itemsize = jnp.dtype(out_dtype).itemsize
    est_vmem = 2 * (tile_rows * fin_pad + fin_pad * fout_pad
                    + tile_rows * fout_pad) * max(x.dtype.itemsize, itemsize)
    return pl.pallas_call(
        _linear_kernel,
        out_shape=jax.ShapeDtypeStruct((n_pad, fout_pad), out_dtype),
        grid=(n_pad // tile_rows,),
        in_specs=[
            pl.BlockSpec((tile_rows, fin_pad), lambda i: (i, 0)),
            pl.BlockSpec((fin_pad, fout_pad), lambda i: (0, 0)),
        ],
        out_specs=pl.BlockSpec((tile_rows, fout_pad), lambda i: (i, 0)),
        compiler_params=pltpu.CompilerParams(
            dimension_semantics=("parallel",),
            vmem_limit_bytes=_vmem_limit(est_vmem)),
        cost_estimate=pl.CostEstimate(
            flops=int(2 * n_pad * fin_pad * fout_pad), transcendentals=0,
            bytes_accessed=int(x.size * x.dtype.itemsize
                               + wt.size * wt.dtype.itemsize
                               + n_pad * fout_pad * itemsize)),
    )(x, wt)


# -----------------------------------------------------------------------------
# Stage 2: out = A @ XW + b  [+ ReLU + inverted dropout]
#   grid = (row tiles "parallel", K tiles "arbitrary"); accumulation goes
#   directly into the resident f32 output block (no scratch).
# -----------------------------------------------------------------------------
def _make_agg_kernel(apply_relu: bool, do_dropout: bool, dropout_p: float,
                     tile_k: int, xw_resident: bool):
    keep_scale = 1.0 / (1.0 - dropout_p) if do_dropout else 1.0

    def kernel(a_ref, xw_ref, b_ref, *rest):
        if do_dropout:
            rand_ref, o_ref = rest
        else:
            (o_ref,) = rest
        k = pl.program_id(1)

        @pl.when(k == 0)
        def _init():
            o_ref[...] = jnp.zeros_like(o_ref)

        if xw_resident:
            off = pl.multiple_of(k * tile_k, tile_k)
            xw = xw_ref[pl.ds(off, tile_k), :]
        else:
            xw = xw_ref[...]
        o_ref[...] += jnp.dot(a_ref[...], xw, preferred_element_type=jnp.float32)

        @pl.when(k == pl.num_programs(1) - 1)
        def _finalize():
            out = o_ref[...] + b_ref[...]
            if apply_relu:
                out = jnp.maximum(out, 0.0)
            if do_dropout:
                keep = rand_ref[...] >= jnp.float32(dropout_p)
                out = jnp.where(keep, out * jnp.float32(keep_scale), 0.0)
            o_ref[...] = out

    return kernel


def gcn_layer(X, A, W, b, *, last=False, dropout=0.2, training=False, seed=0,
              max_tile_rows=512, max_tile_k=1024, compute_dtype=None):
    """Pallas TPU implementation of GCNLayer.forward(X, A).

    X : [N, Fin]     node features
    A : [N, N]       dense adjacency
    W : [Fout, Fin]  torch nn.Linear weight layout
    b : [Fout]
    compute_dtype : None -> bf16 on v6e/v7x, f32 otherwise (f32 MXU accumulation
                    in all cases); pass jnp.float32 / jnp.bfloat16 to override.
    """
    X = jnp.asarray(X, jnp.float32)
    A = jnp.asarray(A, jnp.float32)
    W = jnp.asarray(W, jnp.float32)
    b = jnp.asarray(b, jnp.float32)

    N, Fin = X.shape
    Fout, Fin_w = W.shape
    assert Fin == Fin_w and A.shape == (N, N)

    cdt = jnp.dtype(compute_dtype) if compute_dtype is not None \
        else jnp.dtype(_default_compute_dtype())
    itemsize = cdt.itemsize

    # ---- padded sizes (N only to 128, NOT to the tile size) ------------------
    N_pad = _round_up(N, 128)
    Fin_pad = _round_up(Fin, 128)
    Fout_pad = _round_up(Fout, 128)          # lane-dense output

    # >= 2 row tiles whenever possible so both v7x TensorCores get work.
    tile_n = _pick_tile(N_pad, int(max_tile_rows), min_tiles=2)
    tile_k = _pick_tile(N_pad, int(max_tile_k), min_tiles=1)

    apply_relu = not last
    do_dropout = apply_relu and bool(training) and float(dropout) > 0.0

    # ---- wrapper-side layout glue (cast/pad gated to avoid no-op copies) -----
    A_p = _pad_cast_2d(A, N_pad, N_pad, cdt)
    X_p = _pad_cast_2d(X, N_pad, Fin_pad, cdt)
    Wt_p = _pad_cast_2d(W.T, Fin_pad, Fout_pad, cdt)
    b_p = jnp.pad(b, (0, Fout_pad - Fout)).reshape(1, Fout_pad)   # stays f32

    # Stage 1: XW = X @ W^T  (small matmul, done once)
    XW = _linear(X_p, Wt_p, tile_rows=_pick_tile(N_pad, 512), out_dtype=cdt)

    # Stage 2: fused aggregation + bias + ReLU + dropout
    xw_resident_bytes = 2 * N_pad * Fout_pad * itemsize   # 2 bufs budgeted
    xw_resident = xw_resident_bytes <= (16 << 20)
    if xw_resident:
        xw_spec = pl.BlockSpec((N_pad, Fout_pad), lambda i, k: (0, 0))
        xw_bytes = xw_resident_bytes
    else:
        xw_spec = pl.BlockSpec((tile_k, Fout_pad), lambda i, k: (k, 0))
        xw_bytes = 2 * tile_k * Fout_pad * itemsize

    in_specs = [
        pl.BlockSpec((tile_n, tile_k), lambda i, k: (i, k)),
        xw_spec,
        pl.BlockSpec((1, Fout_pad), lambda i, k: (0, 0)),
    ]
    inputs = [A_p, XW, b_p]
    if do_dropout:
        # TODO(synk): torch's F.dropout RNG stream cannot be reproduced
        # bit-exactly; a jax.random uniform field with identical Bernoulli-keep
        # + 1/(1-p) inverted-dropout semantics is used instead.
        rand = jax.random.uniform(jax.random.PRNGKey(int(seed)),
                                  (N_pad, Fout_pad), jnp.float32)
        in_specs.append(pl.BlockSpec((tile_n, Fout_pad), lambda i, k: (i, 0)))
        inputs.append(rand)

    kernel = _make_agg_kernel(apply_relu, do_dropout, float(dropout),
                              tile_k, xw_resident)
    grid = (N_pad // tile_n, N_pad // tile_k)

    est_vmem = (2 * tile_n * tile_k * itemsize        # A blocks (double-buffered)
                + xw_bytes                            # XW (resident or streamed)
                + 2 * Fout_pad * 4                    # bias
                + 2 * tile_n * Fout_pad * 4           # output block
                + (2 * tile_n * Fout_pad * 4 if do_dropout else 0))
    bytes_accessed = int(A_p.size * itemsize
                         + XW.size * itemsize * (1 if xw_resident else grid[0])
                         + N_pad * Fout_pad * 4
                         + (N_pad * Fout_pad * 4 if do_dropout else 0)
                         + Fout_pad * 4)

    out = pl.pallas_call(
        kernel,
        out_shape=jax.ShapeDtypeStruct((N_pad, Fout_pad), jnp.float32),
        grid=grid,
        in_specs=in_specs,
        out_specs=pl.BlockSpec((tile_n, Fout_pad), lambda i, k: (i, 0)),
        compiler_params=pltpu.CompilerParams(
            dimension_semantics=("parallel", "arbitrary"),
            vmem_limit_bytes=_vmem_limit(est_vmem)),
        cost_estimate=pl.CostEstimate(flops=int(2 * N_pad * N_pad * Fout_pad),
                                      transcendentals=0,
                                      bytes_accessed=bytes_accessed),
    )(*inputs)

    return out[:N, :Fout]


def _init_params(key, in_features, out_features):
    """Parameter init matching GCNLayer.__init__ shapes (xavier_uniform, gain=1.414)."""
    kw, kb = jax.random.split(key)
    gain = 1.414
    bound_w = gain * jnp.sqrt(6.0 / (in_features + out_features))
    W = jax.random.uniform(kw, (out_features, in_features), jnp.float32,
                           minval=-bound_w, maxval=bound_w)
    bound_b = 1.0 / jnp.sqrt(float(in_features))
    b = jax.random.uniform(kb, (out_features,), jnp.float32,
                           minval=-bound_b, maxval=bound_b)
    return W, b


def _rel_err(a, b):
    return float(jnp.max(jnp.abs(a - b)) / (jnp.max(jnp.abs(b)) + 1e-6))


if __name__ == "__main__":
    HIGH = jax.lax.Precision.HIGHEST
    key = jax.random.PRNGKey(0)
    k_x, k_a, k_p, k_x2, k_a2, k_p2 = jax.random.split(key, 6)

    # --- Test 1: small shapes, eval mode, single-tile grid --------------------
    N, F_in, F_out = 16, 32, 32
    X = jax.random.normal(k_x, (N, F_in), dtype=jnp.float32)
    A = jax.random.uniform(k_a, (N, N), dtype=jnp.float32)
    W, b = _init_params(k_p, F_in, F_out)

    out = jax.block_until_ready(
        gcn_layer(X, A, W, b, last=False, dropout=0.2, training=False,
                  compute_dtype=jnp.float32))
    ref = jnp.maximum(
        jnp.dot(jnp.dot(A, X, precision=HIGH), W.T, precision=HIGH) + b, 0.0)
    assert out.shape == (N, F_out)
    assert _rel_err(out, ref) < 2e-3

    # --- Test 2: multi-tile grid (K accumulation + row / feature padding) -----
    N2, F_in2, F_out2 = 320, 64, 48
    X2 = jax.random.normal(k_x2, (N2, F_in2), dtype=jnp.float32)
    A2 = jax.random.uniform(k_a2, (N2, N2), dtype=jnp.float32)
    W2, b2 = _init_params(k_p2, F_in2, F_out2)
    lin2 = jnp.dot(jnp.dot(A2, X2, precision=HIGH), W2.T, precision=HIGH) + b2
    ref2 = jnp.maximum(lin2, 0.0)

    out2 = jax.block_until_ready(
        gcn_layer(X2, A2, W2, b2, last=False, training=False,
                  compute_dtype=jnp.float32))
    assert out2.shape == (N2, F_out2)
    assert _rel_err(out2, ref2) < 2e-3

    # last=True path (no ReLU / dropout)
    out_last = jax.block_until_ready(
        gcn_layer(X2, A2, W2, b2, last=True, compute_dtype=jnp.float32))
    assert _rel_err(out_last, lin2) < 2e-3

    # bf16 A / XW stream (HBM-traffic optimization; default on v6e/v7x), f32 acc
    out_bf16 = jax.block_until_ready(
        gcn_layer(X2, A2, W2, b2, last=False, training=False,
                  compute_dtype=jnp.bfloat16))
    assert _rel_err(out_bf16, ref2) < 5e-2

    # training-mode inverted dropout (jax.random mask; stream differs from torch)
    p = 0.2
    out_tr = jax.block_until_ready(
        gcn_layer(X2, A2, W2, b2, last=False, dropout=p, training=True,
                  seed=123, compute_dtype=jnp.float32))
    kept = out_tr != 0.0
    rescaled = jnp.where(kept, out_tr * (1.0 - p), ref2)
    assert _rel_err(rescaled, ref2) < 2e-3          # kept values scaled by 1/(1-p)
    pos = ref2 > 1e-3
    drop_frac = float(jnp.sum(pos & ~kept)) / max(float(jnp.sum(pos)), 1.0)
    assert 0.05 < drop_frac < 0.4, drop_frac        # ~p of positive entries dropped

    print("KERNEL_OK")
</pallas_src>

<mosaic_0001>
module attributes {stable_mosaic.version = 11 : i64} {
  func.func @_linear_kernel(%arg0: i32, %arg1: memref<128x128xf32, #tpu.memory_space<vmem>>, %arg2: memref<128x128xf32, #tpu.memory_space<vmem>>, %arg3: memref<128x128xf32, #tpu.memory_space<vmem>>) attributes {dimension_semantics = [#tpu.dimension_semantics<parallel>], iteration_bounds = array<i64: 1>, scalar_prefetch = 0 : i64, scratch_operands = 0 : i64, tpu.core_type = #tpu.core_type<tc>, window_params = [{transform_indices = @transform_0, window_bounds = array<i64: 128, 128>}, {pipeline_mode = #tpu.pipeline_mode<synchronous>, transform_indices = @transform_1, window_bounds = array<i64: 128, 128>}, {transform_indices = @transform_2, window_bounds = array<i64: 128, 128>}]} {
    %c0 = arith.constant 0 : index
    %c0_0 = arith.constant 0 : index
    %0 = vector.load %arg1[%c0, %c0_0] : memref<128x128xf32, #tpu.memory_space<vmem>>, vector<128x128xf32>
    %c0_1 = arith.constant 0 : index
    %c0_2 = arith.constant 0 : index
    %1 = vector.load %arg2[%c0_1, %c0_2] : memref<128x128xf32, #tpu.memory_space<vmem>>, vector<128x128xf32>
    %cst = arith.constant dense<0.000000e+00> : vector<128x128xf32>
    %2 = tpu.matmul %0, %1, %cst {dimension_numbers = #tpu.dot_dimension_numbers<[1], [0], [0], [1], [0, 0, 1, 1], [], []>} : vector<128x128xf32>, vector<128x128xf32>, vector<128x128xf32> -> vector<128x128xf32>
    %c0_3 = arith.constant 0 : index
    %c0_4 = arith.constant 0 : index
    %3 = vector.load %arg3[%c0_3, %c0_4] : memref<128x128xf32, #tpu.memory_space<vmem>>, vector<128x128xf32>
    tpu.vector_store %arg3[%c0_3, %c0_4], %2 {strides = array<i32>} : memref<128x128xf32, #tpu.memory_space<vmem>>, vector<128x128xf32>,
    return
  }
  func.func @transform_0(%arg0: i32) -> (i32, i32) {
    %c0_i32 = arith.constant 0 : i32
    %c0_i32_0 = arith.constant 0 : i32
    return %arg0, %c0_i32 : i32, i32
  }
  func.func @transform_1(%arg0: i32) -> (i32, i32) {
    %c0_i32 = arith.constant 0 : i32
    %c0_i32_0 = arith.constant 0 : i32
    %c0_i32_1 = arith.constant 0 : i32
    return %c0_i32, %c0_i32_0 : i32, i32
  }
  func.func @transform_2(%arg0: i32) -> (i32, i32) {
    %c0_i32 = arith.constant 0 : i32
    %c0_i32_0 = arith.constant 0 : i32
    return %arg0, %c0_i32 : i32, i32
  }
}

</mosaic_0001>

<bundles_post_ra>
// kernel: tpu_custom_call.1
= control target key start
LH: loop header
LB: loop body
LE: loop exit
PB: predicated region body
PF: predicated region fallthrough
CT: control target
= control target key end

     0   :  { %7 = vsyncpa [#allocation3], 0  ;;  %s529_s0 = inlined_call_operand.hbm [shape: f32[128,128], index: 0, kind: input, shape index: {}]   ;;  %s530_s1 = inlined_call_operand.hbm [shape: f32[128,128], index: 1, kind: input, shape index: {}]   ;;  %s531_s2 = inlined_call_operand.hbm [shape: f32[128,128], index: 2, kind: output, shape index: {}]  }
   0x1   :  { %8 = vsyncpa [#allocation6], 0 }
   0x2   :  { %9 = vsyncpa [#allocation4], 0  ;;  %s464_s9 = smov [#allocation2]   ;;  %s392_s13 = scalar_lea.hbm %s529_s0, 2048 }
   0x3   :  { %s15_s10 = sshll.u32 %s464_s9, 4  ;;  %p393_p0 = scmp.ne.s32.totalorder %s529_s0, %s392_s13  ;;  %s16_s10 = int_to_ptr.vmem [resolvable:$true] %s15_s10 }
   0x4   :  { %p396_p1 = scmp.lt.u32.totalorder %s392_s13, %s529_s0 }
   0x6   :  { %p398_p2 = pnand %p396_p1, %p393_p0 }
   0x8   :  { %401 = shalt.err (!%p398_p2)
}
   0x9   :  { %s402_s18 = scalar_lea.vmem %s16_s10, 2048  ;;  %p407_p4 = scmp.lt.s32.totalorder %s16_s10, %s16_s10 }
   0xa   :  { %p403_p3 = scmp.ne.s32.totalorder %s16_s10, %s402_s18  ;;  %p408_p5 = scmp.lt.s32.totalorder %s402_s18, %s402_s18 }
   0xc   :  { %p409_p6 = por %p408_p5, %p407_p4 }
   0xe   :  { %p410_p7 = pnand %p409_p6, %p403_p3 }
  0x10   :  { %413 = shalt.err (!%p410_p7)
}
  0x11   :  { %s465_s19 = smov 128   ;;  %s466_s20 = smov 8  }
  0x12   :  { %21 = dma.hbm_to_vmem [thread:$0]  %s529_s0, 2048, %s16_s10, [#allocation3], %s465_s19, %s465_s19, %s466_s20  }
  0x13   :  { %s467_s23 = smov [#allocation5]   ;;  %s414_s27 = scalar_lea.hbm %s530_s1, 2048 }
  0x14   :  { %s27_s24 = sshll.u32 %s467_s23, 4  ;;  %p415_p8 = scmp.ne.s32.totalorder %s530_s1, %s414_s27  ;;  %s28_s24 = int_to_ptr.vmem [resolvable:$true] %s27_s24 }
  0x15   :  { %p418_p9 = scmp.lt.u32.totalorder %s414_s27, %s530_s1 }
  0x17   :  { %p420_p10 = pnand %p418_p9, %p415_p8 }
  0x19   :  { %423 = shalt.err (!%p420_p10)
}
  0x1a   :  { %s424_s4 = scalar_lea.vmem %s28_s24, 2048  ;;  %p429_p12 = scmp.lt.s32.totalorder %s28_s24, %s28_s24 }
  0x1b   :  { %p425_p11 = scmp.ne.s32.totalorder %s28_s24, %s424_s4  ;;  %p430_p13 = scmp.lt.s32.totalorder %s424_s4, %s424_s4 }
  0x1d   :  { %p431_p0 = por %p430_p13, %p429_p12 }
  0x1f   :  { %p432_p1 = pnand %p431_p0, %p425_p11 }
  0x21   :  { %435 = shalt.err (!%p432_p1)
}
  0x22   :  { %33 = dma.hbm_to_vmem [thread:$0]  %s530_s1, 2048, %s28_s24, [#allocation6], %s465_s19, %s465_s19, %s466_s20  }
  0x23   :  { %458 = dma.done.wait [#allocation3], 2048  }
  0x24   :  { %459 = vsyncadd [#allocation3], 4294965248 }
  0x25   :  { %460 = dma.done.wait [#allocation6], 2048  }
  0x26   :  { %461 = vsyncadd [#allocation6], 4294965248  ;;  %v56_v0 = vld [vmem:[#allocation5] sm:$0xff]  ;;  %v57_v1 = vld [vmem:[#allocation5 + $0x8] sm:$0xff]  ;;  %s468_s1 = smov [#allocation7]  }
  0x27   :  { %v58_v2 = vld [vmem:[#allocation5 + $0x10] sm:$0xff]  ;;  %v339_v3 = vpack.c.bf16 %v57_v1, %v56_v0  ;;  %v59_v4 = vld [vmem:[#allocation5 + $0x18] sm:$0xff]  ;;  %v60_v6 = vld [vmem:[#allocation5 + $0x20] sm:$0xff]  ;;  %s238_s6 = sshll.u32 %s468_s1, 4  ;;  %s239_s6 = int_to_ptr.vmem [resolvable:$true] %s238_s6 }
  0x28   :  { %v343_v5 = vpack.c.bf16 %v59_v4, %v58_v2  ;;  %v61_v7 = vld [vmem:[#allocation5 + $0x28] sm:$0xff]  ;;  %v40_v9 = vld [vmem:[#allocation2] sm:$0xff]  ;;  %v62_v11 = vld [vmem:[#allocation5 + $0x30] sm:$0xff]  ;;  %s436_s7 = scalar_lea.vmem %s239_s6, 2048  ;;  %p441_p3 = scmp.lt.s32.totalorder %s239_s6, %s239_s6 }
  0x29   :  { %340 = vmatprep.subr.bf16.mxu0 %v339_v3  ;;  %371 = vmatprep.subr.bf16.mxu1 %v339_v3  ;;  %v347_v8 = vpack.c.bf16 %v61_v7, %v60_v6  ;;  %v48_v10 = vld [vmem:[#allocation2 + $0x40] sm:$0xff]  ;;  %v63_v12 = vld [vmem:[#allocation5 + $0x38] sm:$0xff]  ;;  %v65_v15 = vld [vmem:[#allocation5 + $0x48] sm:$0xff]  ;;  %p437_p2 = scmp.ne.s32.totalorder %s239_s6, %s436_s7  ;;  %p442_p4 = scmp.lt.s32.totalorder %s436_s7, %s436_s7 }
  0x2a   :  { %342 = vmatpush3.bf16.msra.mxu0 %v339_v3  ;;  %379 = vmatpush3.bf16.msra.mxu1 %v339_v3  ;;  %v351_v13 = vpack.c.bf16 %v63_v12, %v62_v11  ;;  %v64_v14 = vld [vmem:[#allocation5 + $0x40] sm:$0xff]  ;;  %v66_v17 = vld [vmem:[#allocation5 + $0x50] sm:$0xff]  ;;  %v67_v18 = vld [vmem:[#allocation5 + $0x58] sm:$0xff] }
  0x2b   :  { %344 = vmatprep.subr.bf16.mxu0 %v343_v5  ;;  %372 = vmatprep.subr.bf16.mxu1 %v343_v5  ;;  %v355_v16 = vpack.c.bf16 %v65_v15, %v64_v14  ;;  %v359_v19 = vpack.c.bf16 %v67_v18, %v66_v17  ;;  %v68_v20 = vld [vmem:[#allocation5 + $0x60] sm:$0xff]  ;;  %v69_v21 = vld [vmem:[#allocation5 + $0x68] sm:$0xff]  ;;  %v70_v23 = vld [vmem:[#allocation5 + $0x70] sm:$0xff]  ;;  %p443_p5 = por %p442_p4, %p441_p3 }
  0x2c   :  { %315 = vmatprep.mubr.f32.mxu0 %v40_v9  ;;  %327 = vmatprep.mubr.f32.mxu1 %v48_v10  ;;  %v363_v22 = vpack.c.bf16 %v69_v21, %v68_v20  ;;  %v71_v24 = vld [vmem:[#allocation5 + $0x78] sm:$0xff]  ;;  %v41_v26 = vld [vmem:[#allocation2 + $0x8] sm:$0xff]  ;;  %v42_v28 = vld [vmem:[#allocation2 + $0x10] sm:$0xff] }
  0x2d   :  { %v367_v25 = vpack.c.bf16 %v71_v24, %v70_v23  ;;  %v49_v27 = vld [vmem:[#allocation2 + $0x48] sm:$0xff]  ;;  %v50_v29 = vld [vmem:[#allocation2 + $0x50] sm:$0xff]  ;;  %v43_v30 = vld [vmem:[#allocation2 + $0x18] sm:$0xff]  ;;  %p444_p6 = pnand %p443_p5, %p437_p2 }
  0x2e   :  { %346 = vmatpush3.bf16.msra.mxu0 %v343_v5  ;;  %380 = vmatpush3.bf16.msra.mxu1 %v343_v5  ;;  %v51_v31 = vld [vmem:[#allocation2 + $0x58] sm:$0xff]  ;;  %v44_v32 = vld [vmem:[#allocation2 + $0x20] sm:$0xff]  ;;  %v45_v34 = vld [vmem:[#allocation2 + $0x28] sm:$0xff] }
  0x2f   :  { %348 = vmatprep.subr.bf16.mxu0 %v347_v8  ;;  %373 = vmatprep.subr.bf16.mxu1 %v347_v8  ;;  %v52_v33 = vld [vmem:[#allocation2 + $0x60] sm:$0xff]  ;;  %v53_v35 = vld [vmem:[#allocation2 + $0x68] sm:$0xff]  ;;  %v46_v36 = vld [vmem:[#allocation2 + $0x30] sm:$0xff] }
  0x30   :  { %v54_v37 = vld [vmem:[#allocation2 + $0x70] sm:$0xff]  ;;  %v47_v38 = vld [vmem:[#allocation2 + $0x38] sm:$0xff] }
  0x31   :  { %v55_v39 = vld [vmem:[#allocation2 + $0x78] sm:$0xff] }
  0x32   :  { %350 = vmatpush3.bf16.msra.mxu0 %v347_v8  ;;  %381 = vmatpush3.bf16.msra.mxu1 %v347_v8 }
  0x33   :  { %352 = vmatprep.subr.bf16.mxu0 %v351_v13  ;;  %374 = vmatprep.subr.bf16.mxu1 %v351_v13 }
  0x36   :  { %354 = vmatpush3.bf16.msra.mxu0 %v351_v13  ;;  %382 = vmatpush3.bf16.msra.mxu1 %v351_v13 }
  0x37   :  { %356 = vmatprep.subr.bf16.mxu0 %v355_v16  ;;  %375 = vmatprep.subr.bf16.mxu1 %v355_v16 }
  0x3a   :  { %358 = vmatpush3.bf16.msra.mxu0 %v355_v16  ;;  %383 = vmatpush3.bf16.msra.mxu1 %v355_v16 }
  0x3b   :  { %360 = vmatprep.subr.bf16.mxu0 %v359_v19  ;;  %376 = vmatprep.subr.bf16.mxu1 %v359_v19 }
  0x3e   :  { %362 = vmatpush3.bf16.msra.mxu0 %v359_v19  ;;  %384 = vmatpush3.bf16.msra.mxu1 %v359_v19 }
  0x3f   :  { %364 = vmatprep.subr.bf16.mxu0 %v363_v22  ;;  %377 = vmatprep.subr.bf16.mxu1 %v363_v22 }
  0x42   :  { %366 = vmatpush3.bf16.msra.mxu0 %v363_v22  ;;  %385 = vmatpush3.bf16.msra.mxu1 %v363_v22 }
  0x43   :  { %368 = vmatprep.subr.bf16.mxu0 %v367_v25  ;;  %378 = vmatprep.subr.bf16.mxu1 %v367_v25 }
  0x46   :  { %370 = vmatpush3.bf16.msra.mxu0 %v367_v25  ;;  %386 = vmatpush3.bf16.msra.mxu1 %v367_v25 }
  0x49   :  { %316 = vmatmul.mubr.f32.vlgmr.msra.gmra.mrb[0].mxu0 %v41_v26  ;;  %328 = vmatmul.mubr.f32.vlgmr.msra.gmra.mrb[0].mxu1 %v49_v27 }
  0x4a   :  { %318 = vmatprep.mubr.f32.mxu0 %v42_v28  ;;  %330 = vmatprep.mubr.f32.mxu1 %v50_v29 }
  0x4d   :  { %319 = vmatmul.mubr.f32.gmra.mrb[2].mxu0 %v43_v30  ;;  %331 = vmatmul.mubr.f32.gmra.mrb[2].mxu1 %v51_v31 }
  0x4e   :  { %321 = vmatprep.mubr.f32.mxu0 %v44_v32  ;;  %333 = vmatprep.mubr.f32.mxu1 %v52_v33 }
  0x51   :  { %322 = vmatmul.mubr.f32.gmra.mrb[4].mxu0 %v45_v34  ;;  %334 = vmatmul.mubr.f32.gmra.mrb[4].mxu1 %v53_v35 }
  0x52   :  { %324 = vmatprep.mubr.f32.mxu0 %v46_v36  ;;  %336 = vmatprep.mubr.f32.mxu1 %v54_v37 }
  0x55   :  { %325 = vmatmul.mubr.f32.gmra.mrb[6].mxu0 %v47_v38  ;;  %337 = vmatmul.mubr.f32.gmra.mrb[6].mxu1 %v55_v39 }
 0x11c   :  { %v317_v40 = vpop.f32.mrb[0].mxu0  ;;  %v329_v41 = vpop.f32.mrb[0].mxu1 }
 0x11d   :  { %218 = vst [vmem:[#allocation7 + $0x8] sm:$0xff] %v317_v40  ;;  %226 = vst [vmem:[#allocation7 + $0x48] sm:$0xff] %v329_v41  ;;  %v138_v42 = vpop.f32.mrb[1].mxu0  ;;  %v178_v43 = vpop.f32.mrb[1].mxu1 }
 0x11e   :  { %217 = vst [vmem:[#allocation7] sm:$0xff] %v138_v42  ;;  %225 = vst [vmem:[#allocation7 + $0x40] sm:$0xff] %v178_v43 }
 0x120   :  { %v320_v44 = vpop.f32.mrb[2].mxu0  ;;  %v332_v45 = vpop.f32.mrb[2].mxu1 }
 0x121   :  { %220 = vst [vmem:[#allocation7 + $0x18] sm:$0xff] %v320_v44  ;;  %228 = vst [vmem:[#allocation7 + $0x58] sm:$0xff] %v332_v45  ;;  %v148_v46 = vpop.f32.mrb[3].mxu0  ;;  %v188_v47 = vpop.f32.mrb[3].mxu1 }
 0x122   :  { %219 = vst [vmem:[#allocation7 + $0x10] sm:$0xff] %v148_v46  ;;  %227 = vst [vmem:[#allocation7 + $0x50] sm:$0xff] %v188_v47 }
 0x124   :  { %v323_v48 = vpop.f32.mrb[4].mxu0  ;;  %v335_v49 = vpop.f32.mrb[4].mxu1 }
 0x125   :  { %222 = vst [vmem:[#allocation7 + $0x28] sm:$0xff] %v323_v48  ;;  %230 = vst [vmem:[#allocation7 + $0x68] sm:$0xff] %v335_v49  ;;  %v158_v50 = vpop.f32.mrb[5].mxu0  ;;  %v198_v51 = vpop.f32.mrb[5].mxu1 }
 0x126   :  { %221 = vst [vmem:[#allocation7 + $0x20] sm:$0xff] %v158_v50  ;;  %229 = vst [vmem:[#allocation7 + $0x60] sm:$0xff] %v198_v51 }
 0x128   :  { %v326_v52 = vpop.f32.mrb[6].mxu0  ;;  %v338_v53 = vpop.f32.mrb[6].mxu1 }
 0x129   :  { %224 = vst [vmem:[#allocation7 + $0x38] sm:$0xff] %v326_v52  ;;  %232 = vst [vmem:[#allocation7 + $0x78] sm:$0xff] %v338_v53  ;;  %v168_v54 = vpop.f32.mrb[7].mxu0  ;;  %v208_v55 = vpop.f32.mrb[7].mxu1 }
 0x12a   :  { %223 = vst [vmem:[#allocation7 + $0x30] sm:$0xff] %v168_v54  ;;  %231 = vst [vmem:[#allocation7 + $0x70] sm:$0xff] %v208_v55 }
 0x12b   :  { %447 = shalt.err (!%p444_p6)
}
 0x12c   :  { %s448_s10 = scalar_lea.hbm %s531_s2, 2048 }
 0x12d   :  { %p449_p7 = scmp.ne.s32.totalorder %s531_s2, %s448_s10  ;;  %p452_p8 = scmp.lt.u32.totalorder %s448_s10, %s531_s2 }
 0x12f   :  { %p454_p9 = pnand %p452_p8, %p449_p7 }
 0x131   :  { %457 = shalt.err (!%p454_p9)
}
 0x132   :  { %244 = dma.vmem_to_hbm [thread:$0]  %s239_s6, 2048, %s531_s2, [#allocation4], %s465_s19, %s465_s19, %s466_s20  }
 0x133   :  { %462 = dma.done.wait [#allocation4], 2048  }
 0x134   :  { %463 = vsyncadd [#allocation4], 4294965248 }
 0x135   :  { %248 = vsyncpa [#allocation3], 1 }
 0x136   :  { %249 = vsyncpa [#allocation6], 1 }
 0x137   :  { %250 = vsyncpa [#allocation4], 1 }

</bundles_post_ra>
